<compile_context>
chip_gen: v7x
topology: tpu7x:2x2x1
jax: 0.10.0
libtpu: 0.0.40
codegen_flags: <defaults>
</compile_context>

<pallas_src>
import functools

import jax
import jax.numpy as jnp
from jax.experimental import pallas as pl
from jax.experimental.pallas import tpu as pltpu


_MAX_BLOCK_BYTES = 4 << 20     # per input buffer; x2 double-buffering ~8 MiB
_TN_TILE = 4096                # lane tile for the reduction axis when n is huge
_TR_CAP = 1024                 # cap on row tile (bounds (tr,128) acc/out padding)


def _cdiv(a, b):
    return -(-a // b)


def _round_up(a, m):
    return _cdiv(a, m) * m


def _static_int_pow(x, e):
    """x**e for a static positive int e, using only VPU multiplies."""
    acc, base = None, x
    while e:
        if e & 1:
            acc = base if acc is None else acc * base
        e >>= 1
        if e:
            base = base * base
    return acc


def _as_static_int_exponent(p_val):
    if p_val is None:
        return None
    p_val = float(p_val)
    if abs(p_val - round(p_val)) < 1e-6:
        ip = int(round(p_val))
        if 1 <= ip <= 16:
            return ip
    return None


def _static_integer_exponent(p):
    """Return p as a small static int if it is concrete and integral, else None."""
    try:
        p_val = float(jax.device_get(jnp.asarray(p)).reshape(()))
    except Exception:  # p is traced (under jit/grad) -> general exp/log path
        return None
    return _as_static_int_exponent(p_val)


def _gem_single_kernel(s_ref, x_ref, o_ref, *, eps, inv_n, int_p):
    # Whole reduction axis resident in one VMEM block; grid = row tiles only.
    # s_ref: SMEM f32[2] -> [p, 1/p];  x_ref: VMEM (tr, n);  o_ref: VMEM (tr, 1)
    x = x_ref[...].astype(jnp.float32)
    xc = jnp.maximum(x, eps)                      # clamp(min=eps)
    if int_p is not None:
        xp = _static_int_pow(xc, int_p)           # VPU-only x**p (default p=3)
    else:
        xp = jnp.exp(s_ref[0] * jnp.log(xc))      # general x**p (EUP)
    m = jnp.sum(xp, axis=-1, keepdims=True) * inv_n
    o_ref[...] = jnp.exp(jnp.log(m) * s_ref[1]).astype(o_ref.dtype)   # ** (1/p)


def _gem_tiled_kernel(s_ref, x_ref, o_ref, acc_ref, *,
                      eps, inv_n, int_p, n_valid, tn, mask):
    # s_ref   : SMEM f32[2]          -> [p, 1/p]
    # x_ref   : VMEM f32[tr, tn]     -> current (row tile, reduction tile)
    # o_ref   : VMEM    [tr, 1]      -> per-row GeM result (written on last k)
    # acc_ref : VMEM f32[tr, 128]    -> lane-dense running sum of x**p
    k = pl.program_id(1)
    last = pl.num_programs(1) - 1

    @pl.when(k == 0)
    def _init():
        acc_ref[...] = jnp.zeros_like(acc_ref)

    x = x_ref[...].astype(jnp.float32)
    xc = jnp.maximum(x, eps)
    if int_p is not None:
        xp = _static_int_pow(xc, int_p)
    else:
        xp = jnp.exp(s_ref[0] * jnp.log(xc))

    chunks = tn // 128  # tn is always a multiple of 128 in the tiled path

    def _accumulate(vals):
        # Pure VALU adds over aligned 128-lane slices; no cross-lane work.
        total = acc_ref[...]
        for j in range(chunks):
            total = total + vals[:, j * 128:(j + 1) * 128]
        acc_ref[...] = total

    if mask:
        # Mask only on the last reduction tile: the OOB tail of that block is
        # garbage (input is NOT host-padded), so zero it before accumulating.
        @pl.when(k != last)
        def _acc_body():
            _accumulate(xp)

        @pl.when(k == last)
        def _acc_tail():
            col = k * tn + jax.lax.broadcasted_iota(jnp.int32, xp.shape, 1)
            _accumulate(jnp.where(col < n_valid, xp, 0.0))
    else:
        _accumulate(xp)

    @pl.when(k == last)
    def _finalize():
        m = jnp.sum(acc_ref[...], axis=-1, keepdims=True) * inv_n   # one XLU reduce
        o_ref[...] = jnp.exp(jnp.log(m) * s_ref[1]).astype(o_ref.dtype)


def gem_pool3d(x, p, eps=1e-4, *, p_static=None, block_rows=None, block_n=None):
    """GeM pooling: x (b, c, ch, f, t) -> (b, c, 1, 1, 1).

    p_static: optional static Python number for p.  Pass it when calling under
    jit/grad (where p is a tracer) to keep the integer-power VPU fast path
    alive instead of falling back to the exp/log EUP path.
    """
    b, c, ch, f, t = x.shape
    rows, n = b * c, ch * f * t
    itemsize = x.dtype.itemsize
    sublane = {4: 8, 2: 16, 1: 32}.get(itemsize, 8)
    max_block_elems = _MAX_BLOCK_BYTES // itemsize

    x2 = x.reshape(rows, n)

    # ---- scalars: p and 1/p, hoisted to SMEM -------------------------------
    p32 = jnp.reshape(p, (1,)).astype(jnp.float32)
    scalars = jnp.concatenate([p32, 1.0 / p32])

    if p_static is not None:
        int_p = _as_static_int_exponent(p_static)
    else:
        int_p = _static_integer_exponent(p)

    # ---- reduction-axis (lane) tile -----------------------------------------
    if block_n is not None and block_n < n:
        tn = max(128, (min(block_n, n) // 128) * 128)
    elif n * sublane <= max_block_elems:
        tn = n                                   # full reduction axis in one block
    else:
        tn = _TN_TILE
    if tn >= n:
        tn, n_tiles, mask, single = n, 1, False, True
    else:
        n_tiles = _cdiv(n, tn)
        mask = (n_tiles * tn != n)               # ragged last n tile -> mask it
        single = False

    # ---- row (sublane) tile --------------------------------------------------
    if block_rows is not None:
        tr = block_rows
    else:
        tr = max_block_elems // tn
    tr = max(sublane, (tr // sublane) * sublane)
    tr = min(tr, _TR_CAP, _round_up(rows, sublane))
    if rows >= 2 * sublane:
        # Guarantee >= 2 row tiles so both v7x TensorCores get work.
        tr = min(tr, _round_up(_cdiv(rows, 2), sublane))
    r_tiles = _cdiv(rows, tr)
    tr = min(tr, _round_up(_cdiv(rows, r_tiles), sublane))   # rebalance raggedness
    r_tiles = _cdiv(rows, tr)
    if r_tiles == 1:
        tr = rows   # block dim == full array dim: always legal, no row padding

    # ---- cost estimate --------------------------------------------------------
    transcendentals = 2 * rows if int_p is not None else 2 * rows * n + 2 * rows
    cost = pl.CostEstimate(
        flops=int(3 * rows * n),
        transcendentals=int(transcendentals),
        bytes_accessed=int(rows * n * itemsize + rows * itemsize),
    )

    out_shape = jax.ShapeDtypeStruct((rows, 1), x.dtype)
    smem_spec = pl.BlockSpec(memory_space=pltpu.MemorySpace.SMEM)

    if single:
        kernel = functools.partial(
            _gem_single_kernel, eps=float(eps), inv_n=1.0 / n, int_p=int_p)
        grid_spec = pltpu.PrefetchScalarGridSpec(
            num_scalar_prefetch=0,
            grid=(r_tiles,),
            in_specs=[smem_spec,
                      pl.BlockSpec((tr, tn), lambda i: (i, 0))],
            out_specs=pl.BlockSpec((tr, 1), lambda i: (i, 0)),
        )
        dims = ("parallel",)
    else:
        kernel = functools.partial(
            _gem_tiled_kernel, eps=float(eps), inv_n=1.0 / n, int_p=int_p,
            n_valid=n, tn=tn, mask=mask)
        grid_spec = pltpu.PrefetchScalarGridSpec(
            num_scalar_prefetch=0,
            grid=(r_tiles, n_tiles),
            in_specs=[smem_spec,
                      pl.BlockSpec((tr, tn), lambda i, k: (i, k))],
            out_specs=pl.BlockSpec((tr, 1), lambda i, k: (i, 0)),
            scratch_shapes=[pltpu.VMEM((tr, 128), jnp.float32)],
        )
        dims = ("parallel", "arbitrary")

    out = pl.pallas_call(
        kernel,
        out_shape=out_shape,
        grid_spec=grid_spec,
        compiler_params=pltpu.CompilerParams(dimension_semantics=dims),
        cost_estimate=cost,
    )(scalars, x2)

    return out.reshape(b, c, 1, 1, 1)


def gem_pool3d_ref(x, p, eps=1e-4):
    p = jnp.reshape(p, ())
    xp = jnp.maximum(x, eps) ** p
    return jnp.mean(xp, axis=(2, 3, 4), keepdims=True) ** (1.0 / p)


if __name__ == "__main__":
    eps = 1e-4
    k1, k2, k3 = jax.random.split(jax.random.PRNGKey(0), 3)

    # Test 1: default GeMPool3d config (p = 3 -> integer-power VPU path),
    # aligned shapes, whole reduction axis in a single block.
    b, c, ch, f, t = 2, 4, 4, 8, 16
    x = jax.random.uniform(k1, (b, c, ch, f, t), dtype=jnp.float32)
    p = jnp.ones((1,), dtype=jnp.float32) * 3.0      # nn.Parameter(torch.ones(1) * 3)
    out = gem_pool3d(x, p, eps)
    jax.block_until_ready(out)
    ref = gem_pool3d_ref(x, p, eps)
    assert out.shape == (b, c, 1, 1, 1), out.shape
    assert jnp.allclose(out, ref, rtol=1e-5, atol=1e-5), (out.ravel(), ref.ravel())

    # Test 2: non-integer p (exp/log path), ragged rows AND ragged n with a
    # forced inner reduction grid -> exercises no-host-pad ragged blocks,
    # last-tile-only column masking, accumulator init/finalize.
    b2, c2, ch2, f2, t2 = 2, 3, 3, 5, 9
    x2 = jax.random.uniform(k2, (b2, c2, ch2, f2, t2), dtype=jnp.float32)
    p2 = jnp.ones((1,), dtype=jnp.float32) * 2.5
    out2 = gem_pool3d(x2, p2, eps, block_rows=8, block_n=128)
    jax.block_until_ready(out2)
    ref2 = gem_pool3d_ref(x2, p2, eps)
    assert out2.shape == (b2, c2, 1, 1, 1), out2.shape
    assert jnp.allclose(out2, ref2, rtol=1e-5, atol=1e-5), (out2.ravel(), ref2.ravel())

    # Test 3: multiple row tiles + multiple aligned reduction tiles (no mask),
    # lane-dense accumulator path, p supplied statically (jit-safe fast path).
    b3, c3, ch3, f3, t3 = 2, 16, 4, 8, 8
    x3 = jax.random.uniform(k3, (b3, c3, ch3, f3, t3), dtype=jnp.float32)
    p3 = jnp.ones((1,), dtype=jnp.float32) * 3.0
    out3 = gem_pool3d(x3, p3, eps, p_static=3, block_rows=16, block_n=128)
    jax.block_until_ready(out3)
    ref3 = gem_pool3d_ref(x3, p3, eps)
    assert out3.shape == (b3, c3, 1, 1, 1), out3.shape
    assert jnp.allclose(out3, ref3, rtol=1e-5, atol=1e-5), (out3.ravel(), ref3.ravel())

    print("KERNEL_OK")
</pallas_src>

<mosaic_0001>
module attributes {stable_mosaic.version = 11 : i64} {
  func.func @_gem_single_kernel(%arg0: i32, %arg1: memref<2xf32, #tpu.memory_space<smem>>, %arg2: memref<8x512xf32, #tpu.memory_space<vmem>>, %arg3: memref<8x1xf32, #tpu.memory_space<vmem>>) attributes {dimension_semantics = [#tpu.dimension_semantics<parallel>], iteration_bounds = array<i64: 1>, scalar_prefetch = 0 : i64, scratch_operands = 0 : i64, tpu.core_type = #tpu.core_type<tc>, window_params = [{transform_indices = @transform_0, window_bounds = array<i64: 2>}, {transform_indices = @transform_1, window_bounds = array<i64: 8, 512>}, {transform_indices = @transform_2, window_bounds = array<i64: 8, 1>}]} {
    %c0 = arith.constant 0 : index
    %c0_0 = arith.constant 0 : index
    %0 = vector.load %arg2[%c0, %c0_0] : memref<8x512xf32, #tpu.memory_space<vmem>>, vector<8x512xf32>
    %cst = arith.constant 9.99999974E-5 : f32
    %1 = vector.broadcast %cst : f32 to vector<8x512xf32>
    %2 = arith.maximumf %0, %1 : vector<8x512xf32>
    %3 = arith.mulf %2, %2 : vector<8x512xf32>
    %4 = arith.mulf %2, %3 : vector<8x512xf32>
    %cst_1 = arith.constant dense<0.000000e+00> : vector<8xf32>
    %5 = vector.multi_reduction <add>, %4, %cst_1 [1] : vector<8x512xf32> to vector<8xf32>
    %6 = vector.shape_cast %5 : vector<8xf32> to vector<8x1xf32>
    %cst_2 = arith.constant 0.001953125 : f32
    %7 = vector.broadcast %cst_2 : f32 to vector<8x1xf32>
    %8 = arith.mulf %6, %7 : vector<8x1xf32>
    %9 = math.log %8 : vector<8x1xf32>
    %c1 = arith.constant 1 : index
    %10 = memref.load %arg1[%c1] : memref<2xf32, #tpu.memory_space<smem>>
    %11 = vector.broadcast %10 : f32 to vector<8x1xf32>
    %12 = arith.mulf %9, %11 : vector<8x1xf32>
    %13 = math.exp %12 : vector<8x1xf32>
    %c0_3 = arith.constant 0 : index
    %c0_4 = arith.constant 0 : index
    %14 = vector.load %arg3[%c0_3, %c0_4] : memref<8x1xf32, #tpu.memory_space<vmem>>, vector<8x1xf32>
    tpu.vector_store %arg3[%c0_3, %c0_4], %13 {strides = array<i32>} : memref<8x1xf32, #tpu.memory_space<vmem>>, vector<8x1xf32>,
    return
  }
  func.func @transform_0(%arg0: i32) -> i32 {
    %c0_i32 = arith.constant 0 : i32
    %c0_i32_0 = arith.constant 0 : i32
    return %c0_i32 : i32
  }
  func.func @transform_1(%arg0: i32) -> (i32, i32) {
    %c0_i32 = arith.constant 0 : i32
    %c0_i32_0 = arith.constant 0 : i32
    return %arg0, %c0_i32 : i32, i32
  }
  func.func @transform_2(%arg0: i32) -> (i32, i32) {
    %c0_i32 = arith.constant 0 : i32
    %c0_i32_0 = arith.constant 0 : i32
    return %arg0, %c0_i32 : i32, i32
  }
}

</mosaic_0001>

<bundles_post_ra>
// kernel: tpu_custom_call.1
= control target key start
LH: loop header
LB: loop body
LE: loop exit
PB: predicated region body
PF: predicated region fallthrough
CT: control target
= control target key end

     0   :  { %7 = vsyncpa [#allocation4], 0  ;;  %s158_s0 = inlined_call_operand.hbm [shape: f32[2], index: 0, kind: input, shape index: {}]   ;;  %s159_s1 = inlined_call_operand.hbm [shape: f32[8,512], index: 1, kind: input, shape index: {}]   ;;  %s160_s2 = inlined_call_operand.vmem [shape: f32[8,1], index: 2, kind: output, shape index: {}]  }
   0x1   :  { %8 = vsyncpa [#allocation3], 0  ;;  %s78_s11 = scalar_lea.hbm %s158_s0, 16 }
   0x2   :  { %p79_p0 = scmp.ne.s32.totalorder %s158_s0, %s78_s11  ;;  %p82_p1 = scmp.lt.u32.totalorder %s78_s11, %s158_s0 }
   0x4   :  { %p84_p2 = pnand %p82_p1, %p79_p0 }
   0x6   :  { %87 = shalt.err (!%p84_p2)
}
   0x7   :  { %s114_s16 = smov [#allocation2]   ;;  %s115_s19 = smov [#allocation5]  }
   0x8   :  { %16 = dma.hbm_to_smem %s158_s0, 16, %s114_s16, [#allocation4]  }
   0x9   :  { %s23_s20 = sshll.u32 %s115_s19, 4  ;;  %s88_s23 = scalar_lea.hbm %s159_s1, 512  ;;  %s24_s20 = int_to_ptr.vmem [resolvable:$true] %s23_s20 }
   0xa   :  { %p89_p3 = scmp.ne.s32.totalorder %s159_s1, %s88_s23  ;;  %p92_p4 = scmp.lt.u32.totalorder %s88_s23, %s159_s1 }
   0xc   :  { %p94_p5 = pnand %p92_p4, %p89_p3 }
   0xe   :  { %97 = shalt.err (!%p94_p5)
}
   0xf   :  { %s98_s28 = scalar_lea.vmem %s24_s20, 512  ;;  %p103_p7 = scmp.lt.s32.totalorder %s24_s20, %s24_s20 }
  0x10   :  { %p99_p6 = scmp.ne.s32.totalorder %s24_s20, %s98_s28  ;;  %p104_p8 = scmp.lt.s32.totalorder %s98_s28, %s98_s28 }
  0x12   :  { %p105_p9 = por %p104_p8, %p103_p7 }
  0x14   :  { %p106_p10 = pnand %p105_p9, %p99_p6 }
  0x16   :  { %109 = shalt.err (!%p106_p10)
}
  0x17   :  { %26 = dma.hbm_to_vmem [thread:$0]  %s159_s1, 512, %s24_s20, [#allocation3]  }
  0x18   :  { %110 = dma.done.wait [#allocation4], 16  }
  0x19   :  { %111 = vsyncadd [#allocation4], 4294967280 }
  0x1a   :  { %112 = dma.done.wait [#allocation3], 512  }
  0x1b   :  { %113 = vsyncadd [#allocation3], 4294966784 }
  0x1c   :  { %33 = sfence }
  0x1d   :  { %v34_v0 = vld [vmem:[#allocation5] sm:$0xff]  ;;  %v35_v1 = vld [vmem:[#allocation5 + $0x8] sm:$0xff]  ;;  %v36_v2 = vld [vmem:[#allocation5 + $0x10] sm:$0xff]  ;;  %s71_s1 = sld [smem:[#allocation2 + $0x1]]  ;;  %vm63_vm0 = vcmask 7168  }
  0x1e   :  { %v37_v3 = vld [vmem:[#allocation5 + $0x18] sm:$0xff]  ;;  %v38_v4 = vmax.f32 %v34_v0, 0.0001  ;;  %v39_v5 = vmax.f32 %v35_v1, 0.0001 }
  0x1f   :  { %v40_v6 = vmax.f32 %v36_v2, 0.0001  ;;  %v41_v7 = vmax.f32 %v37_v3, 0.0001 }
  0x20   :  { %v42_v8 = vmul.f32 %v38_v4, %v38_v4  ;;  %v43_v9 = vmul.f32 %v39_v5, %v39_v5 }
  0x21   :  { %v44_v10 = vmul.f32 %v40_v6, %v40_v6  ;;  %v45_v11 = vmul.f32 %v41_v7, %v41_v7 }
  0x22   :  { %v46_v12 = vmul.f32 %v42_v8, %v38_v4  ;;  %v47_v13 = vmul.f32 %v43_v9, %v39_v5 }
  0x23   :  { %v48_v14 = vmul.f32 %v44_v10, %v40_v6  ;;  %v49_v15 = vmul.f32 %v45_v11, %v41_v7  ;;  %v59_v22 = vstv %s71_s1 }
  0x24   :  { %v50_v16 = vadd.f32 %v47_v13, %v46_v12 }
  0x26   :  { %v51_v17 = vadd.f32 %v50_v16, %v48_v14 }
  0x28   :  { %v52_v18 = vadd.f32 %v51_v17, %v49_v15 }
  0x2a   :  { %53 = vadd.xlane.f32.xlu0 %v52_v18 }
  0xb7   :  { %v54_v19 = vpop.xlane.xlu0 %53 }
  0xb8   :  { %v55_v20 = vmul.f32 0.001953125, %v54_v19 }
  0xba   :  { %74 = vlog2.f32 %v55_v20 }
  0xc4   :  { %v75_v21 = vpop.eup %74 }
  0xc5   :  { %v57_v23 = vmul.f32 0.6931472, %v75_v21 }
  0xc7   :  { %v60_v24 = vmul.f32 %v59_v22, %v57_v23 }
  0xc9   :  { %v61_v25 = vmul.f32 1.442695, %v60_v24 }
  0xcb   :  { %76 = vpow2.f32 %v61_v25 }
  0xd5   :  { %v77_v26 = vpop.eup %76 }
  0xd6   :  { %64 = vst.msk [vmem:[%s160_s2] sm:$0xff] %vm63_vm0, %v77_v26 }
  0xd7   :  { %69 = vsyncpa [#allocation3], 1 }
  0xd8   :  { %70 = vsyncpa [#allocation4], 1 }

</bundles_post_ra>
